<compile_context>
chip_gen: v5e
topology: v5e:2x2
jax: 0.10.0
libtpu: 0.0.40
codegen_flags: <defaults>
</compile_context>

<pallas_src>
import math
import jax
import jax.numpy as jnp
from jax.experimental import pallas as pl
from jax.experimental.pallas import tpu as pltpu


def gc_block_kernel(x_ref, w1_ref, att1_ref, w2_ref, att2_ref,
                    s1_ref, sh1_ref, s2_ref, sh2_ref, o_ref):
    md = w1_ref.dtype                       # matmul input dtype (bf16 by default)
    x = x_ref[...]                          # (N, TB*F) float32, lane-stacked batch

    # --- gc1: att1 @ (x @ W1)   (gc1 bias folded into the BN1 shift) ---
    sup1 = jnp.dot(x.astype(md), w1_ref[...], preferred_element_type=jnp.float32)
    y1 = jnp.dot(att1_ref[...], sup1.astype(md), preferred_element_type=jnp.float32)
    # --- bn1 (eval-mode, folded affine incl. gc1 bias) + tanh ---
    y1 = jnp.tanh(y1 * s1_ref[...] + sh1_ref[...])

    # --- gc2: att2 @ (y1 @ W2)  (gc2 bias folded into the BN2 shift) ---
    sup2 = jnp.dot(y1.astype(md), w2_ref[...], preferred_element_type=jnp.float32)
    y2 = jnp.dot(att2_ref[...], sup2.astype(md), preferred_element_type=jnp.float32)
    # --- bn2 + tanh ---
    y2 = jnp.tanh(y2 * s2_ref[...] + sh2_ref[...])

    # --- residual; lane-dense store (last dim TB*F is a multiple of 128) ---
    o_ref[...] = (y2 + x).astype(o_ref.dtype)


def _choose_batch_tile(B, F):
    """Pick the batch tile TB.

    TB*F must be a multiple of 128 (unmasked vregs / lane-dense stores and a valid
    BlockSpec lane dim).  Grow TB to amortize per-step overhead, but keep >= 2
    grid steps when possible (v7x has 2 TensorCores; the parallel batch axis is
    how the second one gets work) and bound the kron(I_TB, W) redundancy.
    """
    base = 128 // math.gcd(128, F)          # smallest TB with (TB*F) % 128 == 0
    tb = base
    while tb * 2 <= 4 * base and -(-B // (tb * 2)) >= 2:
        tb *= 2
    return tb


def gc_block_forward(x, params, eps=1e-5, matmul_dtype=jnp.bfloat16, batch_tile=None):
    """x: (B, N, F) float32.  Eval-mode GC_Block forward."""
    B, N, F = x.shape
    tb = _choose_batch_tile(B, F) if batch_tile is None else batch_tile
    n_tiles = -(-B // tb)
    Bp = n_tiles * tb
    lanes = tb * F

    # Lane-stacked activation layout: column j = b*F + f  (batch-major on lanes).
    if Bp != B:
        x = jnp.pad(x, ((0, Bp - B), (0, 0), (0, 0)))
    x2d = jnp.transpose(x, (1, 0, 2)).reshape(N, Bp * F)

    # Fold eval-mode BatchNorm1d(N*F) and the gc bias into one per-(n,f) affine,
    # tiled TB times along lanes to match the (N, TB*F) layout.
    def fold(gamma, beta, rmean, rvar, bias):
        scale = (gamma / jnp.sqrt(rvar + eps)).reshape(N, F)
        shift = (beta - rmean * (gamma / jnp.sqrt(rvar + eps))).reshape(N, F)
        shift = shift + bias[None, :] * scale        # gc bias is applied BEFORE the affine
        return (jnp.tile(scale, (1, tb)).astype(jnp.float32),
                jnp.tile(shift, (1, tb)).astype(jnp.float32))

    s1, sh1 = fold(params["bn1_g"], params["bn1_b"], params["bn1_rm"], params["bn1_rv"], params["b1"])
    s2, sh2 = fold(params["bn2_g"], params["bn2_b"], params["bn2_rm"], params["bn2_rv"], params["b2"])

    # Block-diagonal weights so x @ W works directly on the (N, TB*F) slab.
    to_md = lambda a: a.astype(matmul_dtype)
    blockdiag = lambda w: to_md(jnp.kron(jnp.eye(tb, dtype=w.dtype), w))
    w1b, w2b = blockdiag(params["w1"]), blockdiag(params["w2"])
    att1, att2 = to_md(params["att1"]), to_md(params["att2"])

    # Batch-invariant operands: constant index_map -> DMA'd once, stay resident
    # in VMEM across all batch tiles (no per-step re-DMA).
    invariant = lambda shape: pl.BlockSpec(shape, lambda i: (0,) * len(shape))

    out2d = pl.pallas_call(
        gc_block_kernel,
        out_shape=jax.ShapeDtypeStruct((N, Bp * F), x.dtype),
        grid_spec=pltpu.PrefetchScalarGridSpec(
            num_scalar_prefetch=0,
            grid=(n_tiles,),
            in_specs=[
                pl.BlockSpec((N, lanes), lambda i: (0, i)),   # x tile: TB batches, lane-stacked
                invariant((lanes, lanes)),                    # kron(I_TB, W1)   (bf16)
                invariant((N, N)),                            # att1             (bf16)
                invariant((lanes, lanes)),                    # kron(I_TB, W2)   (bf16)
                invariant((N, N)),                            # att2             (bf16)
                invariant((N, lanes)),                        # bn1 scale (tiled)
                invariant((N, lanes)),                        # bn1 shift (+ gc1 bias)
                invariant((N, lanes)),                        # bn2 scale
                invariant((N, lanes)),                        # bn2 shift (+ gc2 bias)
            ],
            out_specs=pl.BlockSpec((N, lanes), lambda i: (0, i)),
        ),
        compiler_params=pltpu.CompilerParams(dimension_semantics=("parallel",)),
    )(x2d, w1b, att1, w2b, att2, s1, sh1, s2, sh2)

    out = out2d.reshape(N, Bp, F).transpose(1, 0, 2)
    return out[:B]


def init_params(key, node_n, in_features):
    """Deterministic init matching the PyTorch module's parameter shapes."""
    F = in_features
    N = node_n
    stdv = 1.0 / math.sqrt(F)
    ks = jax.random.split(key, 12)
    u = lambda k, shape: jax.random.uniform(k, shape, jnp.float32, -stdv, stdv)
    params = {
        "w1": u(ks[0], (F, F)),
        "att1": u(ks[1], (N, N)),
        "b1": u(ks[2], (F,)),
        "w2": u(ks[3], (F, F)),
        "att2": u(ks[4], (N, N)),
        "b2": u(ks[5], (F,)),
        # BatchNorm1d(N*F) parameters / running stats (eval mode).
        "bn1_g": 1.0 + 0.1 * jax.random.normal(ks[6], (N * F,), jnp.float32),
        "bn1_b": 0.1 * jax.random.normal(ks[7], (N * F,), jnp.float32),
        "bn1_rm": 0.1 * jax.random.normal(ks[8], (N * F,), jnp.float32),
        "bn1_rv": 1.0 + 0.1 * jax.random.uniform(ks[9], (N * F,), jnp.float32),
        "bn2_g": 1.0 + 0.1 * jax.random.normal(ks[10], (N * F,), jnp.float32),
        "bn2_b": 0.1 * jax.random.normal(ks[11], (N * F,), jnp.float32),
        "bn2_rm": jnp.zeros((N * F,), jnp.float32),
        "bn2_rv": jnp.ones((N * F,), jnp.float32),
    }
    return params


def gc_block_reference(x, params, eps=1e-5, matmul_dtype=jnp.float32):
    """Pure-JAX reference of the same (eval-mode) forward.

    matmul_dtype=jnp.bfloat16 reproduces the kernel's precision policy
    (bf16 matmul inputs, f32 accumulation) for a numerics-matched comparison.
    """
    B, N, F = x.shape
    md = matmul_dtype

    def gc(h, w, att, b):
        sup = jnp.einsum("bnf,fg->bng", h.astype(md), w.astype(md),
                         preferred_element_type=jnp.float32)
        out = jnp.einsum("mn,bnf->bmf", att.astype(md), sup.astype(md),
                         preferred_element_type=jnp.float32)
        return out + b

    def bn(h, g, bt, rm, rv):
        flat = h.reshape(B, -1)
        flat = (flat - rm) / jnp.sqrt(rv + eps) * g + bt
        return flat.reshape(B, N, F)

    y = gc(x, params["w1"], params["att1"], params["b1"])
    y = jnp.tanh(bn(y, params["bn1_g"], params["bn1_b"], params["bn1_rm"], params["bn1_rv"]))
    y = gc(y, params["w2"], params["att2"], params["b2"])
    y = jnp.tanh(bn(y, params["bn2_g"], params["bn2_b"], params["bn2_rm"], params["bn2_rv"]))
    return y + x


if __name__ == "__main__":
    # batch=8, node_n=48 (module default), in_features=32  -> TB=4, grid=2.
    B, N, F = 8, 48, 32
    key = jax.random.PRNGKey(0)
    kx, kp = jax.random.split(key)
    x = jax.random.normal(kx, (B, N, F), jnp.float32)
    params = init_params(kp, N, F)

    out = jax.block_until_ready(gc_block_forward(x, params))

    # Numerics-matched reference (same bf16-at-MXU-boundary policy, f32 accumulation
    # and f32 BN/tanh/residual).
    ref = gc_block_reference(x, params, matmul_dtype=jnp.bfloat16)

    assert out.shape == (B, N, F)
    assert jnp.allclose(out, ref, atol=5e-3, rtol=5e-3), "mismatch vs reference"
    print("KERNEL_OK")
</pallas_src>

<mosaic_0001>
module attributes {stable_mosaic.version = 11 : i64} {
  func.func @gc_block_kernel(%arg0: i32, %arg1: memref<48x128xf32, #tpu.memory_space<vmem>>, %arg2: memref<128x128xbf16, #tpu.memory_space<vmem>>, %arg3: memref<48x48xbf16, #tpu.memory_space<vmem>>, %arg4: memref<128x128xbf16, #tpu.memory_space<vmem>>, %arg5: memref<48x48xbf16, #tpu.memory_space<vmem>>, %arg6: memref<48x128xf32, #tpu.memory_space<vmem>>, %arg7: memref<48x128xf32, #tpu.memory_space<vmem>>, %arg8: memref<48x128xf32, #tpu.memory_space<vmem>>, %arg9: memref<48x128xf32, #tpu.memory_space<vmem>>, %arg10: memref<48x128xf32, #tpu.memory_space<vmem>>) attributes {dimension_semantics = [#tpu.dimension_semantics<parallel>], iteration_bounds = array<i64: 2>, scalar_prefetch = 0 : i64, scratch_operands = 0 : i64, tpu.core_type = #tpu.core_type<tc>, window_params = [{transform_indices = @transform_0, window_bounds = array<i64: 48, 128>}, {pipeline_mode = #tpu.pipeline_mode<synchronous>, transform_indices = @transform_1, window_bounds = array<i64: 128, 128>}, {pipeline_mode = #tpu.pipeline_mode<synchronous>, transform_indices = @transform_2, window_bounds = array<i64: 48, 48>}, {pipeline_mode = #tpu.pipeline_mode<synchronous>, transform_indices = @transform_3, window_bounds = array<i64: 128, 128>}, {pipeline_mode = #tpu.pipeline_mode<synchronous>, transform_indices = @transform_4, window_bounds = array<i64: 48, 48>}, {pipeline_mode = #tpu.pipeline_mode<synchronous>, transform_indices = @transform_5, window_bounds = array<i64: 48, 128>}, {pipeline_mode = #tpu.pipeline_mode<synchronous>, transform_indices = @transform_6, window_bounds = array<i64: 48, 128>}, {pipeline_mode = #tpu.pipeline_mode<synchronous>, transform_indices = @transform_7, window_bounds = array<i64: 48, 128>}, {pipeline_mode = #tpu.pipeline_mode<synchronous>, transform_indices = @transform_8, window_bounds = array<i64: 48, 128>}, {transform_indices = @transform_9, window_bounds = array<i64: 48, 128>}]} {
    %c0 = arith.constant 0 : index
    %c0_0 = arith.constant 0 : index
    %0 = vector.load %arg1[%c0, %c0_0] : memref<48x128xf32, #tpu.memory_space<vmem>>, vector<48x128xf32>
    %1 = arith.truncf %0 : vector<48x128xf32> to vector<48x128xbf16>
    %c0_1 = arith.constant 0 : index
    %c0_2 = arith.constant 0 : index
    %2 = vector.load %arg2[%c0_1, %c0_2] : memref<128x128xbf16, #tpu.memory_space<vmem>>, vector<128x128xbf16>
    %cst = arith.constant dense<0.000000e+00> : vector<48x128xf32>
    %3 = tpu.matmul %1, %2, %cst {dimension_numbers = #tpu.dot_dimension_numbers<[1], [0], [0], [1], [0, 0, 1, 1], [], []>} : vector<48x128xbf16>, vector<128x128xbf16>, vector<48x128xf32> -> vector<48x128xf32>
    %c0_3 = arith.constant 0 : index
    %c0_4 = arith.constant 0 : index
    %4 = vector.load %arg3[%c0_3, %c0_4] : memref<48x48xbf16, #tpu.memory_space<vmem>>, vector<48x48xbf16>
    %5 = arith.truncf %3 : vector<48x128xf32> to vector<48x128xbf16>
    %cst_5 = arith.constant dense<0.000000e+00> : vector<48x128xf32>
    %6 = tpu.matmul %4, %5, %cst_5 {dimension_numbers = #tpu.dot_dimension_numbers<[1], [0], [0], [1], [0, 0, 1, 1], [], []>} : vector<48x48xbf16>, vector<48x128xbf16>, vector<48x128xf32> -> vector<48x128xf32>
    %c0_6 = arith.constant 0 : index
    %c0_7 = arith.constant 0 : index
    %7 = vector.load %arg6[%c0_6, %c0_7] : memref<48x128xf32, #tpu.memory_space<vmem>>, vector<48x128xf32>
    %8 = arith.mulf %6, %7 : vector<48x128xf32>
    %c0_8 = arith.constant 0 : index
    %c0_9 = arith.constant 0 : index
    %9 = vector.load %arg7[%c0_8, %c0_9] : memref<48x128xf32, #tpu.memory_space<vmem>>, vector<48x128xf32>
    %10 = arith.addf %8, %9 : vector<48x128xf32>
    %11 = math.tanh %10 : vector<48x128xf32>
    %12 = arith.truncf %11 : vector<48x128xf32> to vector<48x128xbf16>
    %c0_10 = arith.constant 0 : index
    %c0_11 = arith.constant 0 : index
    %13 = vector.load %arg4[%c0_10, %c0_11] : memref<128x128xbf16, #tpu.memory_space<vmem>>, vector<128x128xbf16>
    %cst_12 = arith.constant dense<0.000000e+00> : vector<48x128xf32>
    %14 = tpu.matmul %12, %13, %cst_12 {dimension_numbers = #tpu.dot_dimension_numbers<[1], [0], [0], [1], [0, 0, 1, 1], [], []>} : vector<48x128xbf16>, vector<128x128xbf16>, vector<48x128xf32> -> vector<48x128xf32>
    %c0_13 = arith.constant 0 : index
    %c0_14 = arith.constant 0 : index
    %15 = vector.load %arg5[%c0_13, %c0_14] : memref<48x48xbf16, #tpu.memory_space<vmem>>, vector<48x48xbf16>
    %16 = arith.truncf %14 : vector<48x128xf32> to vector<48x128xbf16>
    %cst_15 = arith.constant dense<0.000000e+00> : vector<48x128xf32>
    %17 = tpu.matmul %15, %16, %cst_15 {dimension_numbers = #tpu.dot_dimension_numbers<[1], [0], [0], [1], [0, 0, 1, 1], [], []>} : vector<48x48xbf16>, vector<48x128xbf16>, vector<48x128xf32> -> vector<48x128xf32>
    %c0_16 = arith.constant 0 : index
    %c0_17 = arith.constant 0 : index
    %18 = vector.load %arg8[%c0_16, %c0_17] : memref<48x128xf32, #tpu.memory_space<vmem>>, vector<48x128xf32>
    %19 = arith.mulf %17, %18 : vector<48x128xf32>
    %c0_18 = arith.constant 0 : index
    %c0_19 = arith.constant 0 : index
    %20 = vector.load %arg9[%c0_18, %c0_19] : memref<48x128xf32, #tpu.memory_space<vmem>>, vector<48x128xf32>
    %21 = arith.addf %19, %20 : vector<48x128xf32>
    %22 = math.tanh %21 : vector<48x128xf32>
    %23 = arith.addf %22, %0 : vector<48x128xf32>
    %c0_20 = arith.constant 0 : index
    %c0_21 = arith.constant 0 : index
    %24 = vector.load %arg10[%c0_20, %c0_21] : memref<48x128xf32, #tpu.memory_space<vmem>>, vector<48x128xf32>
    tpu.vector_store %arg10[%c0_20, %c0_21], %23 {strides = array<i32>} : memref<48x128xf32, #tpu.memory_space<vmem>>, vector<48x128xf32>,
    return
  }
  func.func @transform_0(%arg0: i32) -> (i32, i32) {
    %c0_i32 = arith.constant 0 : i32
    %c0_i32_0 = arith.constant 0 : i32
    return %c0_i32, %arg0 : i32, i32
  }
  func.func @transform_1(%arg0: i32) -> (i32, i32) {
    %c0_i32 = arith.constant 0 : i32
    %c0_i32_0 = arith.constant 0 : i32
    %c0_i32_1 = arith.constant 0 : i32
    return %c0_i32, %c0_i32_0 : i32, i32
  }
  func.func @transform_2(%arg0: i32) -> (i32, i32) {
    %c0_i32 = arith.constant 0 : i32
    %c0_i32_0 = arith.constant 0 : i32
    %c0_i32_1 = arith.constant 0 : i32
    return %c0_i32, %c0_i32_0 : i32, i32
  }
  func.func @transform_3(%arg0: i32) -> (i32, i32) {
    %c0_i32 = arith.constant 0 : i32
    %c0_i32_0 = arith.constant 0 : i32
    %c0_i32_1 = arith.constant 0 : i32
    return %c0_i32, %c0_i32_0 : i32, i32
  }
  func.func @transform_4(%arg0: i32) -> (i32, i32) {
    %c0_i32 = arith.constant 0 : i32
    %c0_i32_0 = arith.constant 0 : i32
    %c0_i32_1 = arith.constant 0 : i32
    return %c0_i32, %c0_i32_0 : i32, i32
  }
  func.func @transform_5(%arg0: i32) -> (i32, i32) {
    %c0_i32 = arith.constant 0 : i32
    %c0_i32_0 = arith.constant 0 : i32
    %c0_i32_1 = arith.constant 0 : i32
    return %c0_i32, %c0_i32_0 : i32, i32
  }
  func.func @transform_6(%arg0: i32) -> (i32, i32) {
    %c0_i32 = arith.constant 0 : i32
    %c0_i32_0 = arith.constant 0 : i32
    %c0_i32_1 = arith.constant 0 : i32
    return %c0_i32, %c0_i32_0 : i32, i32
  }
  func.func @transform_7(%arg0: i32) -> (i32, i32) {
    %c0_i32 = arith.constant 0 : i32
    %c0_i32_0 = arith.constant 0 : i32
    %c0_i32_1 = arith.constant 0 : i32
    return %c0_i32, %c0_i32_0 : i32, i32
  }
  func.func @transform_8(%arg0: i32) -> (i32, i32) {
    %c0_i32 = arith.constant 0 : i32
    %c0_i32_0 = arith.constant 0 : i32
    %c0_i32_1 = arith.constant 0 : i32
    return %c0_i32, %c0_i32_0 : i32, i32
  }
  func.func @transform_9(%arg0: i32) -> (i32, i32) {
    %c0_i32 = arith.constant 0 : i32
    %c0_i32_0 = arith.constant 0 : i32
    return %c0_i32, %arg0 : i32, i32
  }
}

</mosaic_0001>

<bundles_post_ra>
// kernel: tpu_custom_call.1
= control target key start
LH: loop header
LB: loop body
LE: loop exit
PB: predicated region body
PF: predicated region fallthrough
CT: control target
= control target key end

     0   :  { %s2011_s0 = inlined_call_operand.hbm [shape: f32[48,256], index: 0, kind: input, shape index: {}]   ;;  %s2012_s1 = inlined_call_operand.hbm [shape: bf16[128,128], index: 1, kind: input, shape index: {}]   ;;  %s2013_s2 = inlined_call_operand.hbm [shape: bf16[48,48], index: 2, kind: input, shape index: {}]   ;;  %s2014_s3 = inlined_call_operand.hbm [shape: bf16[128,128], index: 3, kind: input, shape index: {}]   ;;  %s2015_s4 = inlined_call_operand.hbm [shape: bf16[48,48], index: 4, kind: input, shape index: {}]   ;;  %s2016_s5 = inlined_call_operand.hbm [shape: f32[48,128], index: 5, kind: input, shape index: {}]   ;;  %s2017_s6 = inlined_call_operand.hbm [shape: f32[48,128], index: 6, kind: input, shape index: {}]   ;;  %s2018_s7 = inlined_call_operand.hbm [shape: f32[48,128], index: 7, kind: input, shape index: {}]   ;;  %s2019_s8 = inlined_call_operand.hbm [shape: f32[48,128], index: 8, kind: input, shape index: {}]   ;;  %s2020_s9 = inlined_call_operand.hbm [shape: f32[48,256], index: 9, kind: output, shape index: {}]  }
   0x1   :  { %2023 = sst [smem:[#allocation24_spill]] %s2012_s1 }
   0x2   :  { %2024 = sst [smem:[#allocation25_spill]] %s2013_s2 }
   0x3   :  { %2025 = sst [smem:[#allocation26_spill]] %s2014_s3 }
   0x4   :  { %2026 = sst [smem:[#allocation27_spill]] %s2015_s4 }
   0x5   :  { %2027 = sst [smem:[#allocation28_spill]] %s2016_s5 }
   0x6   :  { %14 = vsyncpa [#allocation3], 0 }
   0x7   :  { %16 = vsyncpa [#allocation3 + $0x1], 0 }
   0x8   :  { %17 = vsyncpa [#allocation6], 0 }
   0x9   :  { %18 = vsyncpa [#allocation9], 0 }
   0xa   :  { %19 = vsyncpa [#allocation12], 0 }
   0xb   :  { %20 = vsyncpa [#allocation15], 0 }
   0xc   :  { %21 = vsyncpa [#allocation4], 0 }
   0xd   :  { %23 = vsyncpa [#allocation4 + $0x1], 0  ;;  %s1745_s30 = smov 0   ;;  %s1747_s10 = smov 0  }
   0xe   :  { %s1749_s11 = smov 0   ;;  %s1751_s12 = smov 0  }
   0xf LB: > { %s2028_s1 = sld [smem:[#allocation24_spill]]  ;;  %s1769_s16 = sadd.s32 4294967295, %s1677_s12   ;;  %s1677_s12 = sphi %s1751_s12, %s2045_s12   ;;  %s1673_s11 = sphi %s1749_s11, %s2044_s11   ;;  %s1669_s10 = sphi %s1747_s10, %s2043_s10   ;;  %s1665_s30 = sphi %s1745_s30, %s2042_s30  }
  0x10   : > { %p1025_p0 = scmp.ge.s32.totalorder %s1677_s12, 1  ;;  %p50_p1 = scmp.eq.s32.totalorder %s1769_s16, 0 }
  0x11   : > { %p254_p2 = scmp.lt.s32.totalorder %s1677_s12, 3  ;;  %s1679_s18 = smov [#allocation5]  }
  0x12   : > { %s267_s19 = sshll.u32 %s1679_s18, 4  ;;  %s2030_s3 = sld [smem:[#allocation26_spill]]  ;;  %s268_s19 = int_to_ptr.vmem [resolvable:$true] %s267_s19 }
  0x13   : > { %p1774_p3 = pnand %p1025_p0, %p254_p2  ;;  %s2032_s5 = sld [smem:[#allocation28_spill]] }
  0x14   : > { %s1680_s27 = smov [#allocation8]   ;;  %s1681_s29 = smov 64  }
  0x15   : > { %s265_s15 = sshll.u32 %s2028_s1, 4  ;;  %p1202_p4 = pneg %p1774_p3  ;;  %s266_s15 = int_to_ptr.hbm [resolvable:$true] %s265_s15 }
  0x16   : > { %s295_s28 = sshll.u32 %s1680_s27, 4  ;;  %s1682_s13 = smov 4   ;;  %s296_s28 = int_to_ptr.vmem [resolvable:$true] %s295_s28 }
  0x17   : > { %p1786_p6 = pnand %p1202_p4, %p50_p1  ;;  %s1683_s14 = smov [#allocation11]  }
  0x18   : > { %s293_s22 = sshll.u32 %s2030_s3, 4  ;;  %s323_s18 = sshll.u32 %s1683_s14, 4  ;;  %s294_s22 = int_to_ptr.hbm [resolvable:$true] %s293_s22  ;;  %s324_s18 = int_to_ptr.vmem [resolvable:$true] %s323_s18 }
  0x19   : > { %s321_s26 = sshll.u32 %s2032_s5, 4  ;;  %s349_s24 = sshll.u32 %s2018_s7, 4  ;;  %s322_s26 = int_to_ptr.hbm [resolvable:$true] %s321_s26  ;;  %s350_s24 = int_to_ptr.hbm [resolvable:$true] %s349_s24 }
  0x1a   : > { %1205 = dma.hbm_to_vmem [thread:$0]  (!%p1786_p6), %s266_s15, 1024, %s268_s19, [#allocation6], %s1681_s29, %s1681_s29, %s1682_s13  }
  0x1b   : > { %1211 = dma.hbm_to_vmem [thread:$0]  (!%p1786_p6), %s294_s22, 1024, %s296_s28, [#allocation9], %s1681_s29, %s1681_s29, %s1682_s13  }
  0x1c   : > { %s2021_s25 = smov 128   ;;  %s2022_s27 = smov 8  }
  0x1d   : > { %1217 = dma.hbm_to_vmem [thread:$0]  (!%p1786_p6), %s322_s26, 768, %s324_s18, [#allocation12], %s2021_s25, %s2021_s25, %s2022_s27  }
  0x1e   : > { %s1686_s15 = smov [#allocation14]   ;;  %s2033_s2 = sld [smem:[#allocation25_spill]] }
  0x1f   : > { %s351_s19 = sshll.u32 %s1686_s15, 4  ;;  %s2034_s4 = sld [smem:[#allocation27_spill]]  ;;  %s352_s19 = int_to_ptr.vmem [resolvable:$true] %s351_s19 }
  0x20   : > { %1223 = dma.hbm_to_vmem [thread:$0]  (!%p1786_p6), %s350_s24, 768, %s352_s19, [#allocation15], %s2021_s25, %s2021_s25, %s2022_s27  }
  0x21   : > { %s1687_s26 = smov [#allocation7]   ;;  %s1688_s1 = smov [#allocation10]  }
  0x22   : > { %s281_s18 = sshll.u32 %s1687_s26, 4  ;;  %s309_s15 = sshll.u32 %s1688_s1, 4  ;;  %s282_s18 = int_to_ptr.vmem [resolvable:$true] %s281_s18  ;;  %s310_s15 = int_to_ptr.vmem [resolvable:$true] %s309_s15 }
  0x23   : > { %s335_s19 = sshll.u32 %s2017_s6, 4  ;;  %s363_s20 = sshll.u32 %s2019_s8, 4  ;;  %s336_s19 = int_to_ptr.hbm [resolvable:$true] %s335_s19  ;;  %s364_s20 = int_to_ptr.hbm [resolvable:$true] %s363_s20 }
  0x24   : > { %s279_s28 = sshll.u32 %s2033_s2, 4  ;;  %s1689_s26 = smov [#allocation13]   ;;  %s280_s28 = int_to_ptr.hbm [resolvable:$true] %s279_s28 }
  0x25   : > { %s307_s21 = sshll.u32 %s2034_s4, 4  ;;  %s1850_s1 = sadd.s32 1, %s1677_s12   ;;  %s308_s21 = int_to_ptr.hbm [resolvable:$true] %s307_s21 }
  0x26   : > { %1208 = dma.hbm_to_vmem [thread:$0]  (!%p1786_p6), %s280_s28, 384, %s282_s18, [#allocation6], %s1681_s29, %s1681_s29, %s1682_s13  }
  0x27   : > { %1214 = dma.hbm_to_vmem [thread:$0]  (!%p1786_p6), %s308_s21, 384, %s310_s15, [#allocation9], %s1681_s29, %s1681_s29, %s1682_s13  }
  0x28   : > { %s337_s18 = sshll.u32 %s1689_s26, 4  ;;  %s1690_s29 = smov [#allocation16]   ;;  %s338_s18 = int_to_ptr.vmem [resolvable:$true] %s337_s18 }
  0x29   : > { %1220 = dma.hbm_to_vmem [thread:$0]  (!%p1786_p6), %s336_s19, 768, %s338_s18, [#allocation12], %s2021_s25, %s2021_s25, %s2022_s27  }
  0x2a   : > { %s365_s13 = sshll.u32 %s1690_s29, 4  ;;  %s1024_s21 = sadd.s32 4294967294, %s1677_s12   ;;  %s366_s13 = int_to_ptr.vmem [resolvable:$true] %s365_s13 }
  0x2b   : > { %1226 = dma.hbm_to_vmem [thread:$0]  (!%p1786_p6), %s364_s20, 768, %s366_s13, [#allocation15], %s2021_s25, %s2021_s25, %s2022_s27  }
  0x2c   : > { %s33_s15 = ssub.s32 %s1677_s12, %s1850_s1  ;;  %s36_s22 = sadd.s32 1, %s1673_s11 }
  0x2d   : > { %p34_p7 = scmp.eq.s32.totalorder %s33_s15, 0  ;;  %p43_p8 = scmp.ne.s32.totalorder %s1673_s11, %s1669_s10 }
  0x2e   : > { %p44_p9 = scmp.eq.s32.totalorder %s1677_s12, 0  ;;  %p49_p10 = scmp.ne.s32.totalorder %s1669_s10, %s1665_s30 }
  0x2f   : > { %s1861_s24 = scalar_select %p34_p7, %s1673_s11, %s36_s22  }
  0x30   : > { %p45_p11 = por %p44_p9, %p43_p8  ;;  %p1865_p12 = por %p50_p1, %p49_p10 }
  0x31   : > { %p241_p13 = scmp.eq.s32.totalorder %s1769_s16, 1  ;;  %p247_p0 = scmp.eq.s32.totalorder %s1024_s21, 1 }
  0x32   : > { %p1243_p2 = scmp.lt.s32.totalorder %s1677_s12, 2  ;;  %s379_s19 = sand.u32 1, %s1673_s11  }
  0x33   : > { %p1872_p4 = por %p241_p13, %p43_p8  ;;  %p1876_p6 = por %p247_p0, %p49_p10 }
  0x34   : > { %s1164_s20 = smul.u32 48, %s379_s19  ;;  %s1035_s26 = sshll.u32 %s1677_s12, 3 }
  0x35   : > { %p1881_p7 = pnand %p1243_p2, %p45_p11  ;;  %s387_s21 = scalar_lea.hbm %s2011_s0, %s1035_s26 }
  0x36   : > { %s388_s15 = sshll.u32 %s387_s21, 4  ;;  %s383_s22 = scalar_lea.vmem [#allocation2], %s1164_s20  ;;  %s389_s15 = int_to_ptr.hbm [resolvable:$true] %s388_s15 }
  0x37   : > { %s390_s25 = sshll.u32 %s383_s22, 4  ;;  %s380_s27 = scalar_lea.sflag [#allocation3], %s379_s19  ;;  %s391_s25 = int_to_ptr.vmem [resolvable:$true] %s390_s25 }
  0x38   : > { %s1565_s2 = sshra.s32 %s389_s15, 4  ;;  %p1569_p9 = pneg %p1881_p7  ;;  %s1566_s2 = int_to_ptr.hbm [resolvable:$true] %s1565_s2 }
  0x39   : > { %s1567_s3 = scalar_lea.hbm %s1566_s2, 48  ;;  %s1572_s29 = scalar_lea.hbm %s2011_s0, 96 }
  0x3a   : > { %p1568_p8 = scmp.ne.s32.totalorder %s1566_s2, %s1567_s3  ;;  %p1573_p13 = scmp.lt.s32.totalorder %s1566_s2, %s2011_s0 }
  0x3b   : > { %p1574_p0 = scmp.lt.s32.totalorder %s1572_s29, %s1567_s3 }
  0x3c   : > { %p1570_p10 = pnand %p1569_p9, %p1568_p8 }
  0x3d   : > { %p1575_p2 = por %p1574_p0, %p1573_p13 }
  0x3e   : > { %p1571_p11 = pneg %p1570_p10 }
  0x40   : > { %p1576_p5 = pnand %p1575_p2, %p1571_p11 }
  0x42   : > { %1579 = shalt.err (!%p1576_p5)
}
  0x43   : > { %s1691_s19 = smov 256   ;;  %s2039_s20 = smov 8  }
  0x44   : > { %s2040_s21 = smov 128   ;;  %402 = sbr.rel (%p1774_p3) target bundleno = 816 (0x330), region = 56 }
  0x45   : > { %1230 = dma.hbm_to_vmem [thread:$0]  (!%p1881_p7), %s389_s15, 768, %s391_s25, %s380_s27, %s1691_s19, %s2040_s21, %s2039_s20  }
  0x46   : > { %s1903_s4 = sand.u32 (!%p1774_p3), 1, %s1669_s10  }
  0x47   : > { %s1165_s2 = smul.u32 (!%p1774_p3), 48, %s1903_s4  ;;  %s405_s3 = scalar_lea.sflag (!%p1774_p3), [#allocation3], %s1903_s4 }
  0x49   : > { %s1909_s5 = scalar_lea.vmem [#allocation2], %s1165_s2 }
  0x4a   : > { %1640 = dma.done.wait (%p1865_p12), %s405_s3, 768  }
  0x4b   : > { %1642 = vsyncadd (%p1865_p12), %s405_s3, 4294966528 }
  0x4c   : > { %1644 = dma.done.wait (%p50_p1), [#allocation6], 1408  }
  0x4d   : > { %1646 = vsyncadd (%p50_p1), [#allocation6], 4294965888 }
  0x4e   : > { %1648 = dma.done.wait (%p50_p1), [#allocation9], 1408  }
  0x4f   : > { %1650 = vsyncadd (%p50_p1), [#allocation9], 4294965888 }
  0x50   : > { %1652 = dma.done.wait (%p50_p1), [#allocation12], 1536  }
  0x51   : > { %1654 = vsyncadd (%p50_p1), [#allocation12], 4294965760 }
  0x52   : > { %1656 = dma.done.wait (%p50_p1), [#allocation15], 1536  }
  0x53   : > { %1658 = vsyncadd (%p50_p1), [#allocation15], 4294965760  ;;  %v1149_v0 = vld [vmem:[#allocation5 + $0x38] sm:$0xff]  ;;  %v1148_v1 = vld [vmem:[#allocation5 + $0x30] sm:$0xff]  ;;  %vm606_vm0 = vcmask 392192   ;;  %s1964_s17 = scalar_lea.vmem [#allocation17], %s1165_s2 }
  0x54   : > { %558 = vmatpush.bf16.msra.mxu0 %v1149_v0  ;;  %v1147_v2 = vld [vmem:[#allocation5 + $0x28] sm:$0xff]  ;;  %v1146_v3 = vld [vmem:[#allocation5 + $0x20] sm:$0xff]  ;;  %v1145_v4 = vld [vmem:[#allocation5 + $0x18] sm:$0xff]  ;;  %s1139_s25 = sshll.u32 %s1769_s16, 3  ;;  %s872_s15 = sshll.u32 %s1964_s17, 4  ;;  %s873_s15 = int_to_ptr.vmem [resolvable:$true] %s872_s15 }
  0x55   : > { %v1144_v5 = vld [vmem:[#allocation5 + $0x10] sm:$0xff]  ;;  %v1143_v6 = vld [vmem:[#allocation5 + $0x8] sm:$0xff]  ;;  %v1142_v7 = vld [vmem:[#allocation5] sm:$0xff]  ;;  %s871_s18 = scalar_lea.hbm %s2020_s9, %s1139_s25  ;;  %s861_s16 = scalar_lea.sflag [#allocation4], %s1903_s4 }
  0x56   : > { %v1932_v8 = vld [vmem:[%s1909_s5] sm:$0xff]  ;;  %v1935_v9 = vld [vmem:[%s1909_s5 + $0x8] sm:$0xff]  ;;  %v1940_v11 = vld [vmem:[%s1909_s5 + $0x10] sm:$0xff]  ;;  %s874_s22 = sshll.u32 %s871_s18, 4  ;;  %s1615_s20 = scalar_lea.hbm %s2020_s9, 96  ;;  %s875_s22 = int_to_ptr.hbm [resolvable:$true] %s874_s22 }
  0x57   : > { %v491_v10 = vpack.c.bf16 %v1935_v9, %v1932_v8  ;;  %v1943_v12 = vld [vmem:[%s1909_s5 + $0x18] sm:$0xff]  ;;  %v1948_v14 = vld [vmem:[%s1909_s5 + $0x20] sm:$0xff]  ;;  %v1951_v15 = vld [vmem:[%s1909_s5 + $0x28] sm:$0xff]  ;;  %s1609_s29 = sshra.s32 %s875_s22, 4  ;;  %s1610_s29 = int_to_ptr.hbm [resolvable:$true] %s1609_s29 }
  0x58   : > { %559 = vmatpush.bf16.msra.mxu0 %v1148_v1  ;;  %v492_v13 = vpack.c.bf16 %v1943_v12, %v1940_v11  ;;  %v493_v16 = vpack.c.bf16 %v1951_v15, %v1948_v14  ;;  %v1150_v26 = vld [vmem:[#allocation7] sm:$0xff]  ;;  %v1160_v27 = vld [vmem:[#allocation8 + $0x38] sm:$0xff]  ;;  %v1159_v28 = vld [vmem:[#allocation8 + $0x30] sm:$0xff]  ;;  %s1611_s13 = scalar_lea.hbm %s1610_s29, 48  ;;  %p1616_p12 = scmp.lt.s32.totalorder %s1610_s29, %s2020_s9 }
  0x59   : > { %737 = vmatpush.bf16.msra.mxu2 %v1160_v27  ;;  %v1158_v29 = vld [vmem:[#allocation8 + $0x28] sm:$0xff]  ;;  %v1151_v30 = vld [vmem:[#allocation7 + $0x8] sm:$0xff]  ;;  %v1152_v31 = vld [vmem:[#allocation7 + $0x10] sm:$0xff]  ;;  %p1612_p1 = scmp.ne.s32.totalorder %s1610_s29, %s1611_s13  ;;  %p1617_p7 = scmp.lt.s32.totalorder %s1615_s20, %s1611_s13 }
  0x5a   : > { %v1157_v32 = vld [vmem:[#allocation8 + $0x20] sm:$0xff]  ;;  %v1156_v33 = vld [vmem:[#allocation8 + $0x18] sm:$0xff]  ;;  %v1155_v34 = vld [vmem:[#allocation8 + $0x10] sm:$0xff] }
  0x5b   : > { %v1154_v35 = vld [vmem:[#allocation8 + $0x8] sm:$0xff]  ;;  %v1153_v36 = vld [vmem:[#allocation8] sm:$0xff]  ;;  %v640_v38 = vld [vmem:[#allocation11] sm:$0xff]  ;;  %p1613_p3 = pnand %p1612_p1, %p1872_p4  ;;  %p1618_p8 = por %p1617_p7, %p1616_p12 }
  0x5c   : > { %560 = vmatpush.bf16.msra.mxu0 %v1147_v2  ;;  %v652_v40 = vld [vmem:[#allocation13] sm:$0xff]  ;;  %v641_v41 = vld [vmem:[#allocation11 + $0x8] sm:$0xff]  ;;  %v653_v44 = vld [vmem:[#allocation13 + $0x8] sm:$0xff] }
  0x5d   : > { %738 = vmatpush.bf16.msra.mxu2 %v1159_v28  ;;  %v642_v48 = vld [vmem:[#allocation11 + $0x10] sm:$0xff]  ;;  %v654_v53 = vld [vmem:[#allocation13 + $0x10] sm:$0xff]  ;;  %v643_v54 = vld [vmem:[#allocation11 + $0x18] sm:$0xff]  ;;  %p1614_p5 = pneg %p1613_p3 }
  0x5e   : > { %v655_v57 = vld [vmem:[#allocation13 + $0x18] sm:$0xff]  ;;  %v644_v61 = vld [vmem:[#allocation11 + $0x20] sm:$0xff]  ;;  %v656_v2 = vld [vmem:[#allocation13 + $0x20] sm:$0xff] }
  0x5f   : > { %v1161_v27 = vld [vmem:[#allocation10] sm:$0xff]  ;;  %v1162_v28 = vld [vmem:[#allocation10 + $0x8] sm:$0xff]  ;;  %p1619_p9 = pnand %p1618_p8, %p1614_p5 }
  0x60   : > { %561 = vmatpush.bf16.msra.mxu0 %v1146_v3  ;;  %v645_v3 = vld [vmem:[#allocation11 + $0x28] sm:$0xff] }
  0x61   : > { %739 = vmatpush.bf16.msra.mxu2 %v1158_v29  ;;  %v1163_v29 = vld [vmem:[#allocation10 + $0x10] sm:$0xff] }
  0x64   : > { %562 = vmatpush.bf16.msra.mxu0 %v1145_v4 }
  0x65   : > { %740 = vmatpush.bf16.msra.mxu2 %v1157_v32  ;;  %v830_v32 = vld [vmem:[#allocation16] sm:$0xff] }
  0x68   : > { %563 = vmatpush.bf16.msra.mxu0 %v1144_v5 }
  0x69   : > { %741 = vmatpush.bf16.msra.mxu2 %v1156_v33 }
  0x6c   : > { %564 = vmatpush.bf16.msra.mxu0 %v1143_v6  ;;  %v657_v6 = vld [vmem:[#allocation13 + $0x28] sm:$0xff] }
  0x6d   : > { %742 = vmatpush.bf16.msra.mxu2 %v1155_v34 }
  0x70   : > { %565 = vmatpush.bf16.msra.mxu0 %v1142_v7 }
  0x71   : > { %743 = vmatpush.bf16.msra.mxu2 %v1154_v35  ;;  %v819_v35 = vld [vmem:[#allocation14 + $0x8] sm:$0xff] }
  0x73   : > { %566 = vmatmul.bf16.vlgmr.msra.gmra.mxu0 %v491_v10 }
  0x75   : > { %744 = vmatpush.bf16.msra.mxu2 %v1153_v36 }
  0x83   : > { %571 = vmatmul.bf16.gmra.mxu0 %v492_v13 }
  0x93   : > { %576 = vmatmul.bf16.gmra.mxu0 %v493_v16 }
  0xf0   : > { %v567_v17 = vpop.f32.mrf.mxu0 }
  0xf8   : > { %v569_v18 = vpop.f32.mrf.mxu0 }
  0xf9   : > { %v588_v25 = vpack.c.bf16 %v569_v18, %v567_v17 }
 0x100   : > { %v572_v19 = vpop.f32.mrf.mxu0 }
 0x108   : > { %v574_v20 = vpop.f32.mrf.mxu0 }
 0x109   : > { %v589_v24 = vpack.c.bf16 %v574_v20, %v572_v19 }
 0x110   : > { %v577_v21 = vpop.f32.mrf.mxu0 }
 0x118   : > { %v579_v22 = vpop.f32.mrf.mxu0 }
 0x119   : > { %v590_v23 = vpack.c.bf16 %v579_v22, %v577_v21 }
 0x11b   : > { %621 = vmatpush.bf16.msra.mxu1 %v590_v23 }
 0x11f   : > { %622 = vmatpush.bf16.msra.mxu1 %v589_v24 }
 0x123   : > { %623 = vmatpush.bf16.msra.mxu1 %v588_v25 }
 0x126   : > { %1089 = vmatmul.msk.bf16.vlgmr.msra.gmra.mxu1 %vm606_vm0, %v1150_v26 }
 0x136   : > { %1090 = vmatmul.msk.bf16.gmra.mxu1 %vm606_vm0, %v1151_v30  ;;  %v818_v30 = vld [vmem:[#allocation14] sm:$0xff] }
 0x146   : > { %1091 = vmatmul.msk.bf16.gmra.mxu1 %vm606_vm0, %v1152_v31 }
 0x1a3   : > { %v625_v37 = vpop.f32.mrf.mxu1 }
 0x1a4   : > { %v646_v39 = vmul.f32 %v640_v38, %v625_v37  ;;  %v831_v37 = vld [vmem:[#allocation16 + $0x8] sm:$0xff] }
 0x1a6   : > { %v658_v42 = vadd.f32 %v652_v40, %v646_v39 }
 0x1a8   : > { %1301 = vtanh.f32 %v658_v42  ;;  %v820_v42 = vld [vmem:[#allocation14 + $0x10] sm:$0xff] }
 0x1ab   : > { %v627_v43 = vpop.f32.mrf.mxu1 }
 0x1ac   : > { %v647_v45 = vmul.f32 %v641_v41, %v627_v43 }
 0x1ae   : > { %v659_v46 = vadd.f32 %v653_v44, %v647_v45  ;;  %v1302_v49 = vpop.eup %1301  ;;  %v832_v44 = vld [vmem:[#allocation16 + $0x10] sm:$0xff] }
 0x1b0   : > { %1303 = vtanh.f32 %v659_v46 }
 0x1b3   : > { %v630_v47 = vpop.f32.mrf.mxu1 }
 0x1b4   : > { %v648_v51 = vmul.f32 %v642_v48, %v630_v47 }
 0x1b6   : > { %v1304_v50 = vpop.eup %1303  ;;  %v660_v55 = vadd.f32 %v654_v53, %v648_v51 }
 0x1b7   : > { %v670_v52 = vpack.c.bf16 %v1304_v50, %v1302_v49  ;;  %v821_v49 = vld [vmem:[#allocation14 + $0x18] sm:$0xff]  ;;  %v833_v50 = vld [vmem:[#allocation16 + $0x18] sm:$0xff] }
 0x1b8   : > { %1305 = vtanh.f32 %v660_v55  ;;  %v822_v55 = vld [vmem:[#allocation14 + $0x20] sm:$0xff] }
 0x1b9   : > { %745 = vmatmul.bf16.vlgmr.msra.gmra.mxu2 %v670_v52 }
 0x1bb   : > { %v632_v56 = vpop.f32.mrf.mxu1 }
 0x1bc   : > { %v649_v58 = vmul.f32 %v643_v54, %v632_v56 }
 0x1be   : > { %v661_v59 = vadd.f32 %v655_v57, %v649_v58  ;;  %v1306_v62 = vpop.eup %1305  ;;  %v834_v57 = vld [vmem:[#allocation16 + $0x20] sm:$0xff] }
 0x1c0   : > { %1307 = vtanh.f32 %v661_v59 }
 0x1c3   : > { %v635_v60 = vpop.f32.mrf.mxu1 }
 0x1c4   : > { %v650_v0 = vmul.f32 %v644_v61, %v635_v60  ;;  %v823_v61 = vld [vmem:[#allocation14 + $0x28] sm:$0xff] }
 0x1c6   : > { %v1308_v63 = vpop.eup %1307  ;;  %v662_v4 = vadd.f32 %v656_v2, %v650_v0 }
 0x1c7   : > { %v671_v1 = vpack.c.bf16 %v1308_v63, %v1306_v62  ;;  %v835_v63 = vld [vmem:[#allocation16 + $0x28] sm:$0xff] }
 0x1c8   : > { %1309 = vtanh.f32 %v662_v4 }
 0x1c9   : > { %750 = vmatmul.bf16.gmra.mxu2 %v671_v1 }
 0x1cb   : > { %v637_v5 = vpop.f32.mrf.mxu1 }
 0x1cc   : > { %v651_v7 = vmul.f32 %v645_v3, %v637_v5 }
 0x1ce   : > { %v663_v10 = vadd.f32 %v657_v6, %v651_v7  ;;  %v1310_v13 = vpop.eup %1309 }
 0x1d0   : > { %1311 = vtanh.f32 %v663_v10 }
 0x1d6   : > { %v1312_v16 = vpop.eup %1311 }
 0x1d7   : > { %v672_v17 = vpack.c.bf16 %v1312_v16, %v1310_v13 }
 0x1d9   : > { %755 = vmatmul.bf16.gmra.mxu2 %v672_v17 }
 0x23c   : > { %v746_v18 = vpop.f32.mrf.mxu2 }
 0x244   : > { %v748_v19 = vpop.f32.mrf.mxu2 }
 0x245   : > { %v767_v26 = vpack.c.bf16 %v748_v19, %v746_v18 }
 0x24c   : > { %v751_v20 = vpop.f32.mrf.mxu2 }
 0x254   : > { %v753_v21 = vpop.f32.mrf.mxu2 }
 0x255   : > { %v768_v25 = vpack.c.bf16 %v753_v21, %v751_v20 }
 0x25c   : > { %v756_v22 = vpop.f32.mrf.mxu2 }
 0x264   : > { %v758_v23 = vpop.f32.mrf.mxu2 }
 0x265   : > { %v769_v24 = vpack.c.bf16 %v758_v23, %v756_v22 }
 0x267   : > { %799 = vmatpush.bf16.msra.mxu3 %v769_v24 }
 0x26b   : > { %800 = vmatpush.bf16.msra.mxu3 %v768_v25 }
 0x26f   : > { %801 = vmatpush.bf16.msra.mxu3 %v767_v26 }
 0x272   : > { %1136 = vmatmul.msk.bf16.vlgmr.msra.gmra.mxu3 %vm606_vm0, %v1161_v27 }
 0x282   : > { %1137 = vmatmul.msk.bf16.gmra.mxu3 %vm606_vm0, %v1162_v28 }
 0x292   : > { %1138 = vmatmul.msk.bf16.gmra.mxu3 %vm606_vm0, %v1163_v29 }
 0x2f5   : > { %v803_v31 = vpop.f32.mrf.mxu3 }
 0x2f6   : > { %v824_v33 = vmul.f32 %v818_v30, %v803_v31 }
 0x2f8   : > { %v836_v34 = vadd.f32 %v830_v32, %v824_v33 }
 0x2fa   : > { %1313 = vtanh.f32 %v836_v34 }
 0x2fd   : > { %v805_v36 = vpop.f32.mrf.mxu3 }
 0x2fe   : > { %v825_v38 = vmul.f32 %v819_v35, %v805_v36 }
 0x300   : > { %v1314_v39 = vpop.eup %1313  ;;  %v837_v40 = vadd.f32 %v831_v37, %v825_v38 }
 0x301   : > { %v848_v41 = vadd.f32 %v1314_v39, %v1932_v8 }
 0x302   : > { %1315 = vtanh.f32 %v837_v40 }
 0x303   : > { %854 = vst [vmem:[%s1964_s17] sm:$0xff] %v848_v41 }
 0x305   : > { %v808_v43 = vpop.f32.mrf.mxu3 }
 0x306   : > { %v826_v45 = vmul.f32 %v820_v42, %v808_v43 }
 0x308   : > { %v1316_v46 = vpop.eup %1315  ;;  %v838_v47 = vadd.f32 %v832_v44, %v826_v45 }
 0x309   : > { %v849_v48 = vadd.f32 %v1316_v46, %v1935_v9 }
 0x30a   : > { %1317 = vtanh.f32 %v838_v47 }
 0x30b   : > { %855 = vst [vmem:[%s1964_s17 + $0x8] sm:$0xff] %v849_v48 }
 0x30d   : > { %v810_v8 = vpop.f32.mrf.mxu3 }
 0x30e   : > { %v827_v51 = vmul.f32 %v821_v49, %v810_v8 }
 0x310   : > { %v1318_v52 = vpop.eup %1317  ;;  %v839_v53 = vadd.f32 %v833_v50, %v827_v51 }
 0x311   : > { %v850_v54 = vadd.f32 %v1318_v52, %v1940_v11 }
 0x312   : > { %1319 = vtanh.f32 %v839_v53 }
 0x313   : > { %856 = vst [vmem:[%s1964_s17 + $0x10] sm:$0xff] %v850_v54 }
 0x315   : > { %v813_v56 = vpop.f32.mrf.mxu3 }
 0x316   : > { %v828_v58 = vmul.f32 %v822_v55, %v813_v56 }
 0x318   : > { %v1320_v9 = vpop.eup %1319  ;;  %v840_v59 = vadd.f32 %v834_v57, %v828_v58 }
 0x319   : > { %v851_v60 = vadd.f32 %v1320_v9, %v1943_v12 }
 0x31a   : > { %1321 = vtanh.f32 %v840_v59 }
 0x31b   : > { %857 = vst [vmem:[%s1964_s17 + $0x18] sm:$0xff] %v851_v60 }
 0x31d   : > { %v815_v62 = vpop.f32.mrf.mxu3 }
 0x31e   : > { %v829_v11 = vmul.f32 %v823_v61, %v815_v62 }
 0x320   : > { %v1322_v0 = vpop.eup %1321  ;;  %v841_v1 = vadd.f32 %v835_v63, %v829_v11 }
 0x321   : > { %v852_v2 = vadd.f32 %v1322_v0, %v1948_v14 }
 0x322   : > { %1323 = vtanh.f32 %v841_v1 }
 0x323   : > { %858 = vst [vmem:[%s1964_s17 + $0x20] sm:$0xff] %v852_v2 }
 0x328   : > { %v1324_v12 = vpop.eup %1323 }
 0x329   : > { %v853_v3 = vadd.f32 %v1324_v12, %v1951_v15 }
 0x32b   : > { %859 = vst [vmem:[%s1964_s17 + $0x28] sm:$0xff] %v853_v3 }
 0x32c   : > { %1622 = shalt.err (!%p1619_p9)
}
 0x32d   : > { %s1692_s4 = smov 128   ;;  %s1693_s3 = smov 256  }
 0x32e   : > { %s1694_s5 = smov 8  }
 0x32f   : > { %1200 = dma.vmem_to_hbm [thread:$0]  (%p1872_p4), %s873_s15, 768, %s875_s22, %s861_s16, %s1692_s4, %s1693_s3, %s1694_s5  }
 0x330 PF: > { %s889_s17 = sand.u32 1, %s1665_s30   ;;  %p2041_p10 = scmp.ge.s32.totalorder %s1677_s12, 2 }
 0x331   : > { %s890_s25 = scalar_lea.sflag [#allocation4], %s889_s17 }
 0x332   : > { %p1232_p11 = pnand %p2041_p10, %p1876_p6 }
 0x334   : > { %p1233_p13 = pneg %p1232_p11 }
 0x336   : > { %1660 = dma.done.wait (%p1233_p13), %s890_s25, 768  }
 0x337   : > { %1662 = vsyncadd (%p1233_p13), %s890_s25, 4294966528  ;;  %p26_p0 = scmp.ge.s32.totalorder %s1850_s1, 4   ;;  %s2042_s30 = smov %s1669_s10 }
 0x338   : > { %s2043_s10 = smov %s1673_s11  ;;  %s2044_s11 = smov %s1861_s24 }
 0x339   : > { %s2045_s12 = smov %s1850_s1  ;;  %28 = sbr.rel (!%p26_p0) target bundleno = 15 (0xf), region = 133 }
 0x33e   :  { %896 = vsyncpa [#allocation3], 1 }
 0x33f   :  { %898 = vsyncpa [#allocation3 + $0x1], 1 }
 0x340   :  { %899 = vsyncpa [#allocation6], 1 }
 0x341   :  { %900 = vsyncpa [#allocation9], 1 }
 0x342   :  { %901 = vsyncpa [#allocation12], 1 }
 0x343   :  { %902 = vsyncpa [#allocation15], 1 }
 0x344   :  { %903 = vsyncpa [#allocation4], 1 }
 0x345   :  { %905 = vsyncpa [#allocation4 + $0x1], 1 }

</bundles_post_ra>
